<compile_context>
chip_gen: v6e
topology: v6e:2x2x1
jax: 0.10.0
libtpu: 0.0.40
codegen_flags: <defaults>
</compile_context>

<pallas_src>
import functools

import jax
import jax.numpy as jnp
from jax.experimental import pallas as pl
from jax.experimental.pallas import tpu as pltpu


def _round_up(x, m):
    return -(-x // m) * m


def _item_kernel(feat_ref, w_ref, out_ref, *, D):
    """Fused MeLU item embedding (one batch tile).

    feat_ref : (bt, Kpad)  f32  [genre | director | actor | rate_one_hot | 0]
    w_ref    : (Kpad, 8*D) f32  packed block-diag weights + denom indicators
    out_ref  : (bt, 4*D)   f32  [rate | genre | director | actor]
    """
    # Single MXU push: lanes [0,4D) = embeddings, lanes [4D,8D) = denominators
    # (per-group row sums broadcast across D lanes; 1.0 for the rate group).
    res = jnp.dot(feat_ref[...], w_ref[...], preferred_element_type=jnp.float32)
    emb = res[:, : 4 * D]           # 128-aligned static slice: free vreg select
    denom = res[:, 4 * D:]
    # Reciprocal-then-multiply; exact (approx=False) to keep 1e-5 accuracy.
    out_ref[...] = (emb * pl.reciprocal(denom + 1e-6)).astype(out_ref.dtype)


def pack_item_weights(emb_rate, w_genre, w_director, w_actor):
    """One-time packing of the module parameters (outside the hot path).

    Contraction-axis row layout matches the fused input X:
        rows [0, ng)            genre      -> emb lanes [D, 2D),  denom lanes [5D, 6D)
        rows [ng, ng+nd)        director   -> emb lanes [2D, 3D), denom lanes [6D, 7D)
        rows [ng+nd, ng+nd+na)  actor      -> emb lanes [3D, 4D), denom lanes [7D, 8D)
        rows [.., ..+nr)        rate 1-hot -> emb lanes [0, D),   denom lanes [4D, 5D)
    """
    D = emb_rate.shape[1]
    nr = emb_rate.shape[0]
    ng = w_genre.shape[1]
    nd = w_director.shape[1]
    na = w_actor.shape[1]
    k_used = ng + nd + na + nr
    k_pad = _round_up(k_used, 8)   # sublane-align K; do NOT pad to 128 lanes

    w = jnp.zeros((k_pad, 8 * D), jnp.float32)
    # Embedding block (output lanes [0, 4D)).
    w = w.at[0:ng, D:2 * D].set(w_genre.T.astype(jnp.float32))
    w = w.at[ng:ng + nd, 2 * D:3 * D].set(w_director.T.astype(jnp.float32))
    w = w.at[ng + nd:ng + nd + na, 3 * D:4 * D].set(w_actor.T.astype(jnp.float32))
    w = w.at[ng + nd + na:k_used, 0:D].set(emb_rate.astype(jnp.float32))
    # Denominator-indicator block (output lanes [4D, 8D)); block-diagonal ones.
    w = w.at[0:ng, 5 * D:6 * D].set(1.0)
    w = w.at[ng:ng + nd, 6 * D:7 * D].set(1.0)
    w = w.at[ng + nd:ng + nd + na, 7 * D:8 * D].set(1.0)
    w = w.at[ng + nd + na:k_used, 4 * D:5 * D].set(1.0)

    sizes = (ng, nd, na, nr, D)
    return w, sizes


@functools.partial(jax.jit, static_argnames=("sizes", "block_b"))
def item_forward(rate_idx, genre_idx, director_idx, actors_idx, w_packed,
                 *, sizes, block_b=512):
    """Wrapper: fuse raw features (+ rate one-hot) and run the batched kernel."""
    ng, nd, na, nr, D = sizes
    B = rate_idx.shape[0]
    k_pad = w_packed.shape[0]
    assert block_b % 8 == 0

    # Single f32 feature block [genre | director | actor | rate_one_hot | 0-pad];
    # the one-hot fuses into the concatenate XLA already performs, so no extra
    # HBM bytes and no separate rate input DMA.
    rate_oh = jax.nn.one_hot(rate_idx.astype(jnp.int32),
                             k_pad - (ng + nd + na), dtype=jnp.float32)
    feats = jnp.concatenate(
        [genre_idx.astype(jnp.float32),
         director_idx.astype(jnp.float32),
         actors_idx.astype(jnp.float32),
         rate_oh], axis=1)                                  # (B, k_pad)

    # Batch tiling (bt multiple of 8); pad rows so the grid divides evenly.
    bt = min(block_b, _round_up(B, 8))
    b_pad = _round_up(B, bt)
    if b_pad != B:
        feats = jnp.pad(feats, ((0, b_pad - B), (0, 0)))    # zero rows -> out 0
    grid = (b_pad // bt,)

    out = pl.pallas_call(
        functools.partial(_item_kernel, D=D),
        out_shape=jax.ShapeDtypeStruct((b_pad, 4 * D), jnp.float32),
        grid_spec=pltpu.PrefetchScalarGridSpec(
            num_scalar_prefetch=0,
            grid=grid,
            in_specs=[
                # feats: one batch tile per grid step (double-buffered).
                pl.BlockSpec((bt, k_pad), lambda i: (i, 0)),
                # weight: same block every step -> fetched once, stays in VMEM.
                pl.BlockSpec((k_pad, 8 * D), lambda i: (0, 0)),
            ],
            out_specs=pl.BlockSpec((bt, 4 * D), lambda i: (i, 0)),
        ),
        compiler_params=pltpu.CompilerParams(
            dimension_semantics=("parallel",)),   # 2 TCs on v7x; no-op on v5e/v6e
    )(feats, w_packed)
    return out[:B]


def _reference(rate_idx, genre_idx, director_idx, actors_idx,
               emb_rate, w_genre, w_director, w_actor):
    """Plain-JAX reference mirroring the PyTorch module."""
    def _norm(xi, w):
        xf = xi.astype(jnp.float32)
        return (xf @ w.T) / (jnp.sum(xf, axis=1, keepdims=True) + 1e-6)
    return jnp.concatenate(
        [emb_rate[rate_idx],
         _norm(genre_idx, w_genre),
         _norm(director_idx, w_director),
         _norm(actors_idx, w_actor)], axis=1)


if __name__ == "__main__":
    config = dict(num_rate=6, num_genre=8, num_director=16, num_actor=24,
                  embedding_dim=32)
    D = config["embedding_dim"]

    key = jax.random.PRNGKey(0)
    k_rate, k_wg, k_wd, k_wa, k_in = jax.random.split(key, 5)

    def _uniform(k, shape, bound):
        return jax.random.uniform(k, shape, jnp.float32, -bound, bound)

    # Parameters (shapes match nn.Embedding / nn.Linear with bias=False).
    emb_rate = jax.random.normal(k_rate, (config["num_rate"], D), jnp.float32)
    w_genre = _uniform(k_wg, (D, config["num_genre"]),
                       1.0 / (config["num_genre"] ** 0.5))
    w_director = _uniform(k_wd, (D, config["num_director"]),
                          1.0 / (config["num_director"] ** 0.5))
    w_actor = _uniform(k_wa, (D, config["num_actor"]),
                       1.0 / (config["num_actor"] ** 0.5))

    # One-time parameter packing (outside the per-call hot path).
    w_packed, sizes = pack_item_weights(emb_rate, w_genre, w_director, w_actor)

    def _make_inputs(k, B):
        ki, kg, kd, ka = jax.random.split(k, 4)
        rate_idx = jax.random.randint(ki, (B,), 0, config["num_rate"])
        genre_idx = jax.random.bernoulli(kg, 0.4, (B, config["num_genre"])).astype(jnp.int32)
        director_idx = jax.random.bernoulli(kd, 0.2, (B, config["num_director"])).astype(jnp.int32)
        actors_idx = jax.random.bernoulli(ka, 0.2, (B, config["num_actor"])).astype(jnp.int32)
        return rate_idx, genre_idx, director_idx, actors_idx

    # Case 1: small reference batch (single grid step).
    B = 8
    inputs = _make_inputs(k_in, B)
    out = item_forward(*inputs, w_packed, sizes=sizes)
    jax.block_until_ready(out)
    ref = _reference(*inputs, emb_rate, w_genre, w_director, w_actor)
    assert out.shape == (B, 4 * D), out.shape
    assert jnp.allclose(out, ref, atol=1e-5, rtol=1e-5), "mismatch vs reference (B=8)"

    # Case 2: ragged batch with a small tile to exercise the multi-step grid
    # (resident weight across steps) and the row-padding path.
    B2 = 37
    inputs2 = _make_inputs(jax.random.fold_in(k_in, 1), B2)
    out2 = item_forward(*inputs2, w_packed, sizes=sizes, block_b=8)
    jax.block_until_ready(out2)
    ref2 = _reference(*inputs2, emb_rate, w_genre, w_director, w_actor)
    assert out2.shape == (B2, 4 * D), out2.shape
    assert jnp.allclose(out2, ref2, atol=1e-5, rtol=1e-5), "mismatch vs reference (B=37)"

    print("KERNEL_OK")
</pallas_src>

<mosaic_0001>
module attributes {stable_mosaic.version = 11 : i64} {
  func.func @_item_kernel(%arg0: i32, %arg1: memref<8x56xf32, #tpu.memory_space<vmem>>, %arg2: memref<56x256xf32, #tpu.memory_space<vmem>>, %arg3: memref<8x128xf32, #tpu.memory_space<vmem>>) attributes {dimension_semantics = [#tpu.dimension_semantics<parallel>], iteration_bounds = array<i64: 1>, scalar_prefetch = 0 : i64, scratch_operands = 0 : i64, tpu.core_type = #tpu.core_type<tc>, window_params = [{transform_indices = @transform_0, window_bounds = array<i64: 8, 56>}, {pipeline_mode = #tpu.pipeline_mode<synchronous>, transform_indices = @transform_1, window_bounds = array<i64: 56, 256>}, {transform_indices = @transform_2, window_bounds = array<i64: 8, 128>}]} {
    %c0 = arith.constant 0 : index
    %c0_0 = arith.constant 0 : index
    %0 = vector.load %arg1[%c0, %c0_0] : memref<8x56xf32, #tpu.memory_space<vmem>>, vector<8x56xf32>
    %c0_1 = arith.constant 0 : index
    %c0_2 = arith.constant 0 : index
    %1 = vector.load %arg2[%c0_1, %c0_2] : memref<56x256xf32, #tpu.memory_space<vmem>>, vector<56x256xf32>
    %cst = arith.constant dense<0.000000e+00> : vector<8x256xf32>
    %2 = tpu.matmul %0, %1, %cst {dimension_numbers = #tpu.dot_dimension_numbers<[1], [0], [0], [1], [0, 0, 1, 1], [], []>} : vector<8x56xf32>, vector<56x256xf32>, vector<8x256xf32> -> vector<8x256xf32>
    %3 = vector.extract_strided_slice %2 {offsets = [0, 0], sizes = [8, 128], strides = [1, 1]} : vector<8x256xf32> to vector<8x128xf32>
    %4 = vector.extract_strided_slice %2 {offsets = [0, 128], sizes = [8, 128], strides = [1, 1]} : vector<8x256xf32> to vector<8x128xf32>
    %cst_3 = arith.constant 9.99999997E-7 : f32
    %5 = vector.broadcast %cst_3 : f32 to vector<8x128xf32>
    %6 = arith.addf %4, %5 : vector<8x128xf32>
    %7 = tpu.reciprocal %6 : vector<8x128xf32> -> vector<8x128xf32>
    %8 = arith.mulf %3, %7 : vector<8x128xf32>
    %c0_4 = arith.constant 0 : index
    %c0_5 = arith.constant 0 : index
    %9 = vector.load %arg3[%c0_4, %c0_5] : memref<8x128xf32, #tpu.memory_space<vmem>>, vector<8x128xf32>
    tpu.vector_store %arg3[%c0_4, %c0_5], %8 {strides = array<i32>} : memref<8x128xf32, #tpu.memory_space<vmem>>, vector<8x128xf32>,
    return
  }
  func.func @transform_0(%arg0: i32) -> (i32, i32) {
    %c0_i32 = arith.constant 0 : i32
    %c0_i32_0 = arith.constant 0 : i32
    return %arg0, %c0_i32 : i32, i32
  }
  func.func @transform_1(%arg0: i32) -> (i32, i32) {
    %c0_i32 = arith.constant 0 : i32
    %c0_i32_0 = arith.constant 0 : i32
    %c0_i32_1 = arith.constant 0 : i32
    return %c0_i32, %c0_i32_0 : i32, i32
  }
  func.func @transform_2(%arg0: i32) -> (i32, i32) {
    %c0_i32 = arith.constant 0 : i32
    %c0_i32_0 = arith.constant 0 : i32
    return %arg0, %c0_i32 : i32, i32
  }
}

</mosaic_0001>

<bundles_post_ra>
// kernel: item_forward.1
= control target key start
LH: loop header
LB: loop body
LE: loop exit
PB: predicated region body
PF: predicated region fallthrough
CT: control target
= control target key end

     0   :  { %7 = vsyncpa [#allocation3], 0  ;;  %s216_s0 = inlined_call_operand.vmem [shape: f32[8,56], index: 0, kind: input, shape index: {}]   ;;  %s217_s1 = inlined_call_operand.hbm [shape: f32[56,256], index: 1, kind: input, shape index: {}]   ;;  %s218_s2 = inlined_call_operand.hbm [shape: f32[8,128], index: 2, kind: output, shape index: {}]  }
   0x1   :  { %8 = vsyncpa [#allocation4], 0  ;;  %s187_s9 = smov [#allocation2]  }
   0x2   :  { %s16_s10 = sshll.u32 %s187_s9, 4  ;;  %s17_s10 = int_to_ptr.vmem [resolvable:$true] %s16_s10 }
   0x3   :  { %s151_s11 = scalar_lea.vmem %s17_s10, 1792  ;;  %p156_p1 = scmp.lt.s32.totalorder %s17_s10, %s17_s10 }
   0x4   :  { %p152_p0 = scmp.ne.s32.totalorder %s17_s10, %s151_s11  ;;  %p157_p2 = scmp.lt.s32.totalorder %s151_s11, %s151_s11 }
   0x6   :  { %p158_p3 = por %p157_p2, %p156_p1 }
   0x8   :  { %p159_p4 = pnand %p158_p3, %p152_p0 }
   0xa   :  { %162 = shalt.err (!%p159_p4)
}
   0xb   :  { %s188_s12 = smov 256   ;;  %s189_s13 = smov 16  }
   0xc   :  { %22 = dma.hbm_to_vmem [thread:$0]  %s217_s1, 1792, %s17_s10, [#allocation3], %s188_s12, %s188_s12, %s189_s13  }
   0xd   :  { %183 = dma.done.wait [#allocation3], 1792  }
   0xe   :  { %184 = vsyncadd [#allocation3], 4294965504  ;;  %v190_v0 = vmov 0.0   ;;  %v40_v1 = vld [vmem:[#allocation2 + $0x68] sm:$0xff]  ;;  %v39_v2 = vld [vmem:[#allocation2 + $0x60] sm:$0xff]  ;;  %vm41_vm0 = vcmask 457728  }
   0xf   :  { %109 = vmatprep.mubr.f32.mxu0 %v190_v0  ;;  %v38_v3 = vld [vmem:[#allocation2 + $0x58] sm:$0xff]  ;;  %63 = vmatprep.subr.mxu0 %v40_v1  ;;  %v37_v4 = vld [vmem:[#allocation2 + $0x50] sm:$0xff]  ;;  %v36_v5 = vld [vmem:[#allocation2 + $0x48] sm:$0xff]  ;;  %s191_s17 = smov [#allocation5]  }
  0x10   :  { %64 = vmatpush1.msra.mxu0 %v39_v2  ;;  %v35_v6 = vld [vmem:[#allocation2 + $0x40] sm:$0xff]  ;;  %v34_v7 = vld [vmem:[#allocation2 + $0x38] sm:$0xff]  ;;  %v33_v8 = vld [vmem:[#allocation2 + $0x30] sm:$0xff]  ;;  %s126_s18 = sshll.u32 %s191_s17, 4  ;;  %s127_s18 = int_to_ptr.vmem [resolvable:$true] %s126_s18 }
  0x11   :  { %65 = vmatprep.subr.mxu0 %v38_v3  ;;  %v32_v9 = vld [vmem:[#allocation2 + $0x28] sm:$0xff]  ;;  %v31_v10 = vld [vmem:[#allocation2 + $0x20] sm:$0xff]  ;;  %v30_v11 = vld [vmem:[#allocation2 + $0x18] sm:$0xff]  ;;  %s163_s19 = scalar_lea.vmem %s127_s18, 128  ;;  %p168_p6 = scmp.lt.s32.totalorder %s127_s18, %s127_s18 }
  0x12   :  { %66 = vmatpush1.msra.mxu0 %v37_v4  ;;  %v29_v12 = vld [vmem:[#allocation2 + $0x10] sm:$0xff]  ;;  %v28_v13 = vld [vmem:[#allocation2 + $0x8] sm:$0xff]  ;;  %v27_v14 = vld [vmem:[#allocation2] sm:$0xff]  ;;  %p164_p5 = scmp.ne.s32.totalorder %s127_s18, %s163_s19  ;;  %p169_p7 = scmp.lt.s32.totalorder %s163_s19, %s163_s19 }
  0x13   :  { %67 = vmatprep.subr.mxu0 %v36_v5  ;;  %v26_v15 = vld [vmem:[%s216_s0] sm:$0xff] }
  0x14   :  { %68 = vmatpush1.msra.mxu0 %v35_v6  ;;  %p170_p8 = por %p169_p7, %p168_p6 }
  0x15   :  { %69 = vmatprep.subr.mxu0 %v34_v7 }
  0x16   :  { %70 = vmatpush1.msra.mxu0 %v33_v8  ;;  %p171_p9 = pnand %p170_p8, %p164_p5 }
  0x17   :  { %71 = vmatprep.subr.mxu0 %v32_v9 }
  0x18   :  { %72 = vmatpush1.msra.mxu0 %v31_v10 }
  0x19   :  { %73 = vmatprep.subr.mxu0 %v30_v11 }
  0x1a   :  { %74 = vmatpush1.msra.mxu0 %v29_v12 }
  0x1b   :  { %75 = vmatprep.subr.mxu0 %v28_v13 }
  0x1c   :  { %76 = vmatpush1.msra.mxu0 %v27_v14 }
  0x1d   :  { %135 = vmatmul.mubr.msk.f32.vlgmr.msra.gmra.mxu0 %vm41_vm0, %v26_v15 }
  0xdd   :  { %v111_v16 = vpop.f32.mrf.mxu0 }
  0xdf   :  { %v113_v17 = vpop.f32.mrf.mxu0 }
  0xe0   :  { %v116_v18 = vadd.f32 1e-06, %v113_v17 }
  0xe2   :  { %141 = vrcp.f32 %v116_v18 }
  0xef   :  { %v142_v19 = vpop.eup %141 }
  0xf0   :  { %v118_v20 = vmul.f32 %v142_v19, %v111_v16 }
  0xf2   :  { %119 = vst [vmem:[#allocation5] sm:$0xff] %v118_v20 }
  0xf3   :  { %174 = shalt.err (!%p171_p9)
}
  0xf4   :  { %129 = dma.vmem_to_hbm [thread:$0]  %s127_s18, 128, %s218_s2, [#allocation4]  }
  0xf5   :  { %185 = dma.done.wait [#allocation4], 128  }
  0xf6   :  { %186 = vsyncadd [#allocation4], 4294967168 }
  0xf7   :  { %133 = vsyncpa [#allocation3], 1 }
  0xf8   :  { %134 = vsyncpa [#allocation4], 1 }

</bundles_post_ra>
